<compile_context>
chip_gen: v5e
topology: v5e:2x2
jax: 0.10.0
libtpu: 0.0.40
codegen_flags: <defaults>
</compile_context>

<pallas_src>
import jax
import jax.numpy as jnp
from jax import lax
from jax.experimental import pallas as pl
from jax.experimental.pallas import tpu as pltpu


MM_DTYPE = jnp.bfloat16  # MXU operand dtype; accumulation is always f32.


# ----------------------------------------------------------------------------- in-kernel helpers
def _shift_rows(x, h_img, up):
    """Per-image row shift of an (bblk*H, L) f32 block.

    up=True : row r <- x[r-1], zero at each image's top row (h == 0)
    up=False: row r <- x[r+1], zero at each image's bottom row (h == H-1)
    Image boundaries inside a multi-image block are masked so images never bleed into each other.
    (pltpu.roll(axis=0) + mask is the XLU-slot alternative; slice+concat kept for robust lowering.)
    """
    rows, cols = x.shape
    zrow = jnp.zeros((1, cols), x.dtype)
    if up:
        sh = jnp.concatenate([zrow, x[:-1]], axis=0)
    else:
        sh = jnp.concatenate([x[1:], zrow], axis=0)
    if rows > h_img:  # more than one image per block: zero interior image-boundary rows too
        rid = lax.broadcasted_iota(jnp.int32, (rows, 1), 0) % h_img
        bad = (rid == 0) if up else (rid == h_img - 1)
        sh = jnp.where(bad, jnp.zeros_like(sh), sh)
    return sh


def _tap_matmul(x, band_ref, h_img):
    """y = sum_kh row_shift(kh-1)(x) @ band[kh]  -- a 3x3 conv (kw + W padding already folded into
    the band matrices) as MXU matmuls.  `x` is the f32 activation block (bblk*H, wc); operands are
    cast to the band-matrix dtype (bf16) only at the dot, so all relayouts stay in f32."""
    rows, wc = x.shape
    dt = band_ref.dtype
    x_up = _shift_rows(x, h_img, up=True)
    x_dn = _shift_rows(x, h_img, up=False)
    if wc % 128 == 0:
        # Lane-aligned K-concat: one matmul, accumulation stays inside the MXU.
        xk = jnp.concatenate([x_up, x, x_dn], axis=1)                   # (rows, 3*wc) f32
        return jnp.dot(xk.astype(dt), band_ref[...],
                       preferred_element_type=jnp.float32)
    # wc not a multiple of 128: an in-lane concat would be unaligned, keep 3 matmuls (still one
    # resident band matrix, two VPU adds).
    acc = jnp.dot(x_up.astype(dt), band_ref[0:wc, :], preferred_element_type=jnp.float32)
    acc = acc + jnp.dot(x.astype(dt), band_ref[wc:2 * wc, :], preferred_element_type=jnp.float32)
    acc = acc + jnp.dot(x_dn.astype(dt), band_ref[2 * wc:3 * wc, :],
                        preferred_element_type=jnp.float32)
    return acc


# ----------------------------------------------------------------------------- kernels
def conv1_stats_kernel(x_ref, a_ref, y_ref, stat_ref):
    # x_ref   : (bblk, H, W*Cin)  f32 lane-dense input images
    # a_ref   : (3*W*Cin, W*Cout) bf16 band matrices (kw taps + W padding folded in), kh-stacked
    # y_ref   : (bblk, H, W*Cout) bf16 conv1 output (bias-free; bias cancels under batch-stat BN)
    # stat_ref: (1, 2, W*Cout)    f32 per-step BN partials: row 0 = sum, row 1 = sum of squares
    bblk, h_img, wcin = x_ref.shape
    x = x_ref[...].reshape(bblk * h_img, wcin)                          # (rows, W*Cin) f32
    acc = _tap_matmul(x, a_ref, h_img)                                  # (rows, W*Cout) f32
    y_ref[...] = acc.astype(y_ref.dtype).reshape(y_ref.shape)
    s1 = jnp.sum(acc, axis=0, keepdims=True)
    s2 = jnp.sum(acc * acc, axis=0, keepdims=True)
    stat_ref[0] = jnp.concatenate([s1, s2], axis=0)                     # (2, W*Cout)


def bn_conv2_pool_kernel(y_ref, sc_ref, sh_ref, bp_ref, b2_ref, o_ref):
    # y_ref : (bblk, H, W*C)        bf16 conv1 output
    # sc_ref: (1, W*C)              f32 folded BN scale (tiled across W)
    # sh_ref: (1, W*C)              f32 folded BN shift (tiled across W)
    # bp_ref: (3*W*C, pack*Wo*C)    bf16 conv2 band matrices with horizontal avg-pool (x 1/4)
    #                               folded in, lane-duplicated `pack` times
    # b2_ref: (1, pack*Wo*C)        f32 conv2 bias (tiled)
    # o_ref : (bblk, Ho//pack, pack*Wo*C)  f32 pooled output, lane-dense packed row pairs
    bblk, h_img, wc = y_ref.shape
    rows = bblk * h_img
    ho = h_img // 2
    pack = ho // o_ref.shape[1]
    lanes_out = bp_ref.shape[1]
    woc = lanes_out // pack

    y = y_ref[...].reshape(rows, wc).astype(jnp.float32)
    h = jnp.maximum(y * sc_ref[...] + sh_ref[...], 0.0)                 # BN affine + ReLU (VPU, f32)
    z = _tap_matmul(h, bp_ref, h_img)                                   # (rows, lanes_out) f32;
                                                                        # horizontal pool + 1/4 folded in
    groups = 2 * pack                                                   # conv rows per stored row
    zg = z.reshape(rows // groups, groups, lanes_out)
    if pack == 1:
        zs = jnp.sum(zg, axis=1)                                        # vertical half of 2x2 pool
    else:
        # RHS is lane-duplicated `pack`x, so every row carries `pack` identical Wo*C copies.
        # Select copy j for lane-bucket j from conv rows (2j, 2j+1) -> lane-dense packed store.
        midx = lax.broadcasted_iota(jnp.int32, (groups, lanes_out), 0) // 2
        bidx = lax.broadcasted_iota(jnp.int32, (groups, lanes_out), 1) // woc
        sel = (midx == bidx).astype(z.dtype)
        zs = jnp.sum(zg * sel[None, :, :], axis=1)
    o_ref[...] = (zs + b2_ref[...]).reshape(o_ref.shape)


# ----------------------------------------------------------------------------- weight preprocessing
def _band_matrices(w_hwio, width):
    """Fold a 3x3 HWIO conv's kw taps (and the W zero-padding) into per-kh matmul matrices.

    Returns A of shape (3, width*Ci, width*Co) with
      A[kh][w_in*Ci + ci, w_out*Co + co] = w[kh, w_in - w_out + 1, ci, co]  (0 if |w_in-w_out| > 1)
    so that  y[h, w_out*Co + co] = sum_kh x_shifted_by(kh-1)[h, :] @ A[kh].
    """
    _, _, ci, co = w_hwio.shape
    wi = jnp.arange(width)[:, None]
    wo = jnp.arange(width)[None, :]
    kw = wi - wo + 1                                                    # (W, W)
    valid = ((kw >= 0) & (kw <= 2)).astype(w_hwio.dtype)
    kw_c = jnp.clip(kw, 0, 2)
    blocks = w_hwio[:, kw_c, :, :] * valid[None, :, :, None, None]      # (3, W, W, Ci, Co)
    return blocks.transpose(0, 1, 3, 2, 4).reshape(3, width * ci, width * co)


def _pick_block_batch(n, h, target_rows=256):
    """Images per grid step: fill the MXU M-dim (~target_rows rows per step) while keeping >= 2
    grid steps when N >= 2 so v7x's two TensorCores split the "parallel" batch axis.  (For large
    shapes also cap against the v7x 64 MiB VMEM budget -- trivial at this toy size.)"""
    want = max(1, target_rows // max(h, 1))
    if n >= 2:
        want = min(want, n // 2)
    want = max(1, min(want, n))
    while n % want != 0:
        want -= 1
    return want


# ----------------------------------------------------------------------------- forward
def downsample_forward(x_nchw, w1, b1, gamma, beta, w2, b2, eps=1e-5):
    """Full DownSample forward. Input NCHW, output NCHW (like the PyTorch module, training-mode BN)."""
    N, Cin, H, W = x_nchw.shape
    Cout = w1.shape[-1]
    assert H % 2 == 0 and W % 2 == 0, "AvgPool2d(2,2) needs even H and W"
    Ho, Wo = H // 2, W // 2
    # conv1 bias cancels exactly under training-mode BatchNorm (batch statistics) -> dropped.
    del b1

    bblk = _pick_block_batch(N, H)
    nsteps = N // bblk

    # Lane-dense relayout NCHW -> (N, H, W*C).  At real sizes carry this layout through the
    # surrounding graph (each standalone transpose is a full HBM round-trip); could also be bf16.
    x = jnp.transpose(x_nchw, (0, 2, 3, 1)).reshape(N, H, W * Cin)

    # ---- tiny one-time weight transforms (glue) -----------------------------------------------
    a1k = _band_matrices(w1, W).reshape(3 * W * Cin, W * Cout).astype(MM_DTYPE)

    woc = Wo * Cout
    pack = 1                                                            # pooled rows per output row
    if woc % 128 != 0:
        for p in (2, 4, 8):
            if Ho % p == 0 and (p * woc) % 128 == 0:
                pack = p
                break

    b2m = _band_matrices(w2, W)                                         # (3, W*Cout, W*Cout)
    pool = (jnp.arange(W)[:, None] // 2 == jnp.arange(Wo)[None, :]).astype(jnp.float32)
    p_full = 0.25 * jnp.kron(pool, jnp.eye(Cout, dtype=jnp.float32))    # (W*Cout, Wo*Cout)
    bpk = jnp.einsum("kij,jl->kil", b2m, p_full).reshape(3 * W * Cout, woc)
    if pack > 1:
        bpk = jnp.concatenate([bpk] * pack, axis=1)                     # lane-duplicate for packed store
    bpk = bpk.astype(MM_DTYPE)
    b2_t = jnp.tile(b2, pack * Wo).reshape(1, pack * woc).astype(jnp.float32)

    # ---- kernel 1: conv1 (banded MXU matmul) + BN partial statistics; y1 kept bf16 in HBM ------
    y1, stats = pl.pallas_call(
        conv1_stats_kernel,
        out_shape=(
            jax.ShapeDtypeStruct((N, H, W * Cout), MM_DTYPE),
            jax.ShapeDtypeStruct((nsteps, 2, W * Cout), jnp.float32),
        ),
        grid_spec=pltpu.PrefetchScalarGridSpec(
            num_scalar_prefetch=0,
            grid=(nsteps,),
            in_specs=[
                pl.BlockSpec((bblk, H, W * Cin), lambda b: (b, 0, 0)),
                pl.BlockSpec((3 * W * Cin, W * Cout), lambda b: (0, 0)),
            ],
            out_specs=[
                pl.BlockSpec((bblk, H, W * Cout), lambda b: (b, 0, 0)),
                pl.BlockSpec((1, 2, W * Cout), lambda b: (b, 0, 0)),
            ],
        ),
        compiler_params=pltpu.CompilerParams(dimension_semantics=("parallel",)),
    )(x, a1k)

    # ---- BN batch stats from the tiny (nsteps, 2, W*Cout) partials (no pass over y1) -----------
    cnt = N * H * W
    s = stats[:, 0, :].sum(axis=0).reshape(W, Cout).sum(axis=0)
    ss = stats[:, 1, :].sum(axis=0).reshape(W, Cout).sum(axis=0)
    mean = s / cnt
    var = jnp.maximum(ss / cnt - mean * mean, 0.0)                      # biased var; guard cancellation
    scale = gamma * lax.rsqrt(var + eps)
    shift = beta - mean * scale
    scale_t = jnp.tile(scale, W).reshape(1, W * Cout).astype(jnp.float32)
    shift_t = jnp.tile(shift, W).reshape(1, W * Cout).astype(jnp.float32)

    # ---- kernel 2: BN affine + ReLU + conv2 + 2x2 avg-pool, lane-dense packed output -----------
    out = pl.pallas_call(
        bn_conv2_pool_kernel,
        out_shape=jax.ShapeDtypeStruct((N, Ho // pack, pack * woc), jnp.float32),
        grid_spec=pltpu.PrefetchScalarGridSpec(
            num_scalar_prefetch=0,
            grid=(nsteps,),
            in_specs=[
                pl.BlockSpec((bblk, H, W * Cout), lambda b: (b, 0, 0)),
                pl.BlockSpec((1, W * Cout), lambda b: (0, 0)),
                pl.BlockSpec((1, W * Cout), lambda b: (0, 0)),
                pl.BlockSpec((3 * W * Cout, pack * woc), lambda b: (0, 0)),
                pl.BlockSpec((1, pack * woc), lambda b: (0, 0)),
            ],
            out_specs=pl.BlockSpec((bblk, Ho // pack, pack * woc), lambda b: (b, 0, 0)),
        ),
        compiler_params=pltpu.CompilerParams(dimension_semantics=("parallel",)),
    )(y1, scale_t, shift_t, bpk, b2_t)

    # Unpack the lane-dense slab and return NCHW like the PyTorch module (free reshape + transpose).
    return jnp.transpose(out.reshape(N, Ho, Wo, Cout), (0, 3, 1, 2))


# ----------------------------------------------------------------------------- pure-JAX reference
def reference(x_nchw, w1, b1, gamma, beta, w2, b2, eps=1e-5):
    x = jnp.transpose(x_nchw, (0, 2, 3, 1))
    dn = ("NHWC", "HWIO", "NHWC")
    y1 = lax.conv_general_dilated(x, w1, (1, 1), ((1, 1), (1, 1)),
                                  dimension_numbers=dn,
                                  precision=lax.Precision.HIGHEST) + b1
    mean = jnp.mean(y1, axis=(0, 1, 2))
    var = jnp.mean((y1 - mean) ** 2, axis=(0, 1, 2))
    h = jnp.maximum((y1 - mean) * lax.rsqrt(var + eps) * gamma + beta, 0.0)
    y2 = lax.conv_general_dilated(h, w2, (1, 1), ((1, 1), (1, 1)),
                                  dimension_numbers=dn,
                                  precision=lax.Precision.HIGHEST) + b2
    N, H, W, C = y2.shape
    out = y2.reshape(N, H // 2, 2, W // 2, 2, C).mean(axis=(2, 4))
    return jnp.transpose(out, (0, 3, 1, 2))


# ----------------------------------------------------------------------------- main
if __name__ == "__main__":
    # N=4 so the batch-blocked path (bblk=2 images per step, 2 grid steps) is exercised.
    N, Cin, Cout, H, W = 4, 4, 8, 16, 16
    key = jax.random.PRNGKey(0)
    ks = jax.random.split(key, 7)

    x = jax.random.normal(ks[0], (N, Cin, H, W), jnp.float32)              # NCHW, like PyTorch
    # weights generated directly in HWIO (a PyTorch OIHW weight would be transposed (2,3,1,0))
    w1 = 0.2 * jax.random.normal(ks[1], (3, 3, Cin, Cout), jnp.float32)
    b1 = 0.1 * jax.random.normal(ks[2], (Cout,), jnp.float32)
    gamma = 1.0 + 0.1 * jax.random.normal(ks[3], (Cout,), jnp.float32)
    beta = 0.1 * jax.random.normal(ks[4], (Cout,), jnp.float32)
    w2 = 0.2 * jax.random.normal(ks[5], (3, 3, Cout, Cout), jnp.float32)
    b2 = 0.1 * jax.random.normal(ks[6], (Cout,), jnp.float32)

    out = downsample_forward(x, w1, b1, gamma, beta, w2, b2)
    out = jax.block_until_ready(out)
    assert out.shape == (N, Cout, H // 2, W // 2), out.shape

    ref = reference(x, w1, b1, gamma, beta, w2, b2)
    max_err = float(jnp.max(jnp.abs(out - ref)))
    # bf16 MXU operands + bf16 y1 HBM round-trip -> bf16-level tolerance vs the f32 reference.
    if not bool(jnp.allclose(out, ref, atol=6e-2, rtol=6e-2)):
        raise AssertionError(f"Pallas result mismatch vs reference (max abs err = {max_err})")

    print("KERNEL_OK")
</pallas_src>

<mosaic_0001>
module attributes {stable_mosaic.version = 11 : i64} {
  func.func @conv1_stats_kernel(%arg0: i32, %arg1: memref<2x16x64xf32, #tpu.memory_space<vmem>>, %arg2: memref<192x128xbf16, #tpu.memory_space<vmem>>, %arg3: memref<2x16x128xbf16, #tpu.memory_space<vmem>>, %arg4: memref<1x2x128xf32, #tpu.memory_space<vmem>>) attributes {dimension_semantics = [#tpu.dimension_semantics<parallel>], iteration_bounds = array<i64: 2>, scalar_prefetch = 0 : i64, scratch_operands = 0 : i64, tpu.core_type = #tpu.core_type<tc>, window_params = [{transform_indices = @transform_0, window_bounds = array<i64: 2, 16, 64>}, {pipeline_mode = #tpu.pipeline_mode<synchronous>, transform_indices = @transform_1, window_bounds = array<i64: 192, 128>}, {transform_indices = @transform_2, window_bounds = array<i64: 2, 16, 128>}, {transform_indices = @transform_3, window_bounds = array<i64: 1, 2, 128>}]} {
    %c0 = arith.constant 0 : index
    %c0_0 = arith.constant 0 : index
    %c0_1 = arith.constant 0 : index
    %0 = vector.load %arg1[%c0, %c0_0, %c0_1] : memref<2x16x64xf32, #tpu.memory_space<vmem>>, vector<2x16x64xf32>
    %1 = vector.shape_cast %0 : vector<2x16x64xf32> to vector<32x64xf32>
    %cst = arith.constant 0.000000e+00 : f32
    %2 = vector.broadcast %cst : f32 to vector<1x64xf32>
    %3 = vector.extract_strided_slice %1 {offsets = [0, 0], sizes = [31, 64], strides = [1, 1]} : vector<32x64xf32> to vector<31x64xf32>
    %4 = tpu.concatenate %2, %3 in 0 : vector<1x64xf32>, vector<31x64xf32> -> vector<32x64xf32>
    %5 = tpu.iota {dimensions = array<i32: 0>} : vector<32x1xi32>
    %c16_i32 = arith.constant 16 : i32
    %c0_i32 = arith.constant 0 : i32
    %6 = arith.cmpi eq, %c16_i32, %c0_i32 : i32
    %c1_i32 = arith.constant 1 : i32
    %7 = arith.select %6, %c1_i32, %c16_i32 : i32
    %8 = vector.broadcast %7 : i32 to vector<32x1xi32>
    %9 = arith.remsi %5, %8 : vector<32x1xi32>
    %c0_i32_2 = arith.constant 0 : i32
    %10 = vector.broadcast %c0_i32_2 : i32 to vector<32x1xi32>
    %11 = arith.cmpi ne, %9, %10 : vector<32x1xi32>
    %c0_i32_3 = arith.constant 0 : i32
    %12 = vector.broadcast %c0_i32_3 : i32 to vector<32x1xi32>
    %13 = arith.cmpi slt, %9, %12 : vector<32x1xi32>
    %c0_i32_4 = arith.constant 0 : i32
    %14 = arith.cmpi slt, %7, %c0_i32_4 : i32
    %15 = vector.broadcast %14 : i1 to vector<32x1xi1>
    %16 = vector.broadcast %15 : vector<32x1xi1> to vector<32x1xi1>
    %17 = arith.xori %13, %16 : vector<32x1xi1>
    %18 = arith.andi %17, %11 : vector<32x1xi1>
    %19 = vector.broadcast %7 : i32 to vector<32x1xi32>
    %20 = arith.addi %9, %19 : vector<32x1xi32>
    %21 = arith.select %18, %20, %9 : vector<32x1xi1>, vector<32x1xi32>
    %c0_i32_5 = arith.constant 0 : i32
    %22 = vector.broadcast %c0_i32_5 : i32 to vector<32x1xi32>
    %23 = arith.cmpi eq, %21, %22 : vector<32x1xi32>
    %cst_6 = arith.constant 0.000000e+00 : f32
    %24 = vector.broadcast %cst_6 : f32 to vector<32x64xf32>
    %25 = vector.shape_cast %23 : vector<32x1xi1> to vector<32x1xi1>
    %26 = vector.broadcast %25 : vector<32x1xi1> to vector<32x64xi1>
    %27 = arith.select %26, %24, %4 : vector<32x64xi1>, vector<32x64xf32>
    %cst_7 = arith.constant 0.000000e+00 : f32
    %28 = vector.broadcast %cst_7 : f32 to vector<1x64xf32>
    %29 = vector.extract_strided_slice %1 {offsets = [1, 0], sizes = [31, 64], strides = [1, 1]} : vector<32x64xf32> to vector<31x64xf32>
    %30 = tpu.concatenate %29, %28 in 0 : vector<31x64xf32>, vector<1x64xf32> -> vector<32x64xf32>
    %31 = tpu.iota {dimensions = array<i32: 0>} : vector<32x1xi32>
    %c16_i32_8 = arith.constant 16 : i32
    %c0_i32_9 = arith.constant 0 : i32
    %32 = arith.cmpi eq, %c16_i32_8, %c0_i32_9 : i32
    %c1_i32_10 = arith.constant 1 : i32
    %33 = arith.select %32, %c1_i32_10, %c16_i32_8 : i32
    %34 = vector.broadcast %33 : i32 to vector<32x1xi32>
    %35 = arith.remsi %31, %34 : vector<32x1xi32>
    %c0_i32_11 = arith.constant 0 : i32
    %36 = vector.broadcast %c0_i32_11 : i32 to vector<32x1xi32>
    %37 = arith.cmpi ne, %35, %36 : vector<32x1xi32>
    %c0_i32_12 = arith.constant 0 : i32
    %38 = vector.broadcast %c0_i32_12 : i32 to vector<32x1xi32>
    %39 = arith.cmpi slt, %35, %38 : vector<32x1xi32>
    %c0_i32_13 = arith.constant 0 : i32
    %40 = arith.cmpi slt, %33, %c0_i32_13 : i32
    %41 = vector.broadcast %40 : i1 to vector<32x1xi1>
    %42 = vector.broadcast %41 : vector<32x1xi1> to vector<32x1xi1>
    %43 = arith.xori %39, %42 : vector<32x1xi1>
    %44 = arith.andi %43, %37 : vector<32x1xi1>
    %45 = vector.broadcast %33 : i32 to vector<32x1xi32>
    %46 = arith.addi %35, %45 : vector<32x1xi32>
    %47 = arith.select %44, %46, %35 : vector<32x1xi1>, vector<32x1xi32>
    %c15_i32 = arith.constant 15 : i32
    %48 = vector.broadcast %c15_i32 : i32 to vector<32x1xi32>
    %49 = arith.cmpi eq, %47, %48 : vector<32x1xi32>
    %cst_14 = arith.constant 0.000000e+00 : f32
    %50 = vector.broadcast %cst_14 : f32 to vector<32x64xf32>
    %51 = vector.shape_cast %49 : vector<32x1xi1> to vector<32x1xi1>
    %52 = vector.broadcast %51 : vector<32x1xi1> to vector<32x64xi1>
    %53 = arith.select %52, %50, %30 : vector<32x64xi1>, vector<32x64xf32>
    %54 = arith.truncf %27 : vector<32x64xf32> to vector<32x64xbf16>
    %c0_15 = arith.constant 0 : index
    %c0_16 = arith.constant 0 : index
    %55 = vector.load %arg2[%c0_15, %c0_16] : memref<192x128xbf16, #tpu.memory_space<vmem>>, vector<64x128xbf16>
    %cst_17 = arith.constant dense<0.000000e+00> : vector<32x128xf32>
    %56 = tpu.matmul %54, %55, %cst_17 {dimension_numbers = #tpu.dot_dimension_numbers<[1], [0], [0], [1], [0, 0, 1, 1], [], []>} : vector<32x64xbf16>, vector<64x128xbf16>, vector<32x128xf32> -> vector<32x128xf32>
    %57 = arith.truncf %1 : vector<32x64xf32> to vector<32x64xbf16>
    %c64 = arith.constant 64 : index
    %c0_18 = arith.constant 0 : index
    %58 = vector.load %arg2[%c64, %c0_18] : memref<192x128xbf16, #tpu.memory_space<vmem>>, vector<64x128xbf16>
    %cst_19 = arith.constant dense<0.000000e+00> : vector<32x128xf32>
    %59 = tpu.matmul %57, %58, %cst_19 {dimension_numbers = #tpu.dot_dimension_numbers<[1], [0], [0], [1], [0, 0, 1, 1], [], []>} : vector<32x64xbf16>, vector<64x128xbf16>, vector<32x128xf32> -> vector<32x128xf32>
    %60 = arith.addf %56, %59 : vector<32x128xf32>
    %61 = arith.truncf %53 : vector<32x64xf32> to vector<32x64xbf16>
    %c128 = arith.constant 128 : index
    %c0_20 = arith.constant 0 : index
    %62 = vector.load %arg2[%c128, %c0_20] : memref<192x128xbf16, #tpu.memory_space<vmem>>, vector<64x128xbf16>
    %cst_21 = arith.constant dense<0.000000e+00> : vector<32x128xf32>
    %63 = tpu.matmul %61, %62, %cst_21 {dimension_numbers = #tpu.dot_dimension_numbers<[1], [0], [0], [1], [0, 0, 1, 1], [], []>} : vector<32x64xbf16>, vector<64x128xbf16>, vector<32x128xf32> -> vector<32x128xf32>
    %64 = arith.addf %60, %63 : vector<32x128xf32>
    %65 = arith.truncf %64 : vector<32x128xf32> to vector<32x128xbf16>
    %66 = vector.shape_cast %65 : vector<32x128xbf16> to vector<2x16x128xbf16>
    %c0_22 = arith.constant 0 : index
    %c0_23 = arith.constant 0 : index
    %c0_24 = arith.constant 0 : index
    %67 = vector.load %arg3[%c0_22, %c0_23, %c0_24] : memref<2x16x128xbf16, #tpu.memory_space<vmem>>, vector<2x16x128xbf16>
    tpu.vector_store %arg3[%c0_22, %c0_23, %c0_24], %66 {strides = array<i32>} : memref<2x16x128xbf16, #tpu.memory_space<vmem>>, vector<2x16x128xbf16>,
    %cst_25 = arith.constant dense<0.000000e+00> : vector<128xf32>
    %68 = vector.multi_reduction <add>, %64, %cst_25 [0] : vector<32x128xf32> to vector<128xf32>
    %69 = vector.shape_cast %68 : vector<128xf32> to vector<1x128xf32>
    %70 = arith.mulf %64, %64 : vector<32x128xf32>
    %cst_26 = arith.constant dense<0.000000e+00> : vector<128xf32>
    %71 = vector.multi_reduction <add>, %70, %cst_26 [0] : vector<32x128xf32> to vector<128xf32>
    %72 = vector.shape_cast %71 : vector<128xf32> to vector<1x128xf32>
    %73 = tpu.concatenate %69, %72 in 0 : vector<1x128xf32>, vector<1x128xf32> -> vector<2x128xf32>
    %c0_27 = arith.constant 0 : index
    %c0_28 = arith.constant 0 : index
    %c0_29 = arith.constant 0 : index
    %74 = vector.load %arg4[%c0_27, %c0_28, %c0_29] : memref<1x2x128xf32, #tpu.memory_space<vmem>>, vector<1x2x128xf32>
    %75 = vector.shape_cast %74 : vector<1x2x128xf32> to vector<2x128xf32>
    %76 = vector.shape_cast %73 : vector<2x128xf32> to vector<1x2x128xf32>
    tpu.vector_store %arg4[%c0_27, %c0_28, %c0_29], %76 {strides = array<i32>} : memref<1x2x128xf32, #tpu.memory_space<vmem>>, vector<1x2x128xf32>,
    return
  }
  func.func @transform_0(%arg0: i32) -> (i32, i32, i32) {
    %c0_i32 = arith.constant 0 : i32
    %c0_i32_0 = arith.constant 0 : i32
    %c0_i32_1 = arith.constant 0 : i32
    return %arg0, %c0_i32, %c0_i32_0 : i32, i32, i32
  }
  func.func @transform_1(%arg0: i32) -> (i32, i32) {
    %c0_i32 = arith.constant 0 : i32
    %c0_i32_0 = arith.constant 0 : i32
    %c0_i32_1 = arith.constant 0 : i32
    return %c0_i32, %c0_i32_0 : i32, i32
  }
  func.func @transform_2(%arg0: i32) -> (i32, i32, i32) {
    %c0_i32 = arith.constant 0 : i32
    %c0_i32_0 = arith.constant 0 : i32
    %c0_i32_1 = arith.constant 0 : i32
    return %arg0, %c0_i32, %c0_i32_0 : i32, i32, i32
  }
  func.func @transform_3(%arg0: i32) -> (i32, i32, i32) {
    %c0_i32 = arith.constant 0 : i32
    %c0_i32_0 = arith.constant 0 : i32
    %c0_i32_1 = arith.constant 0 : i32
    return %arg0, %c0_i32, %c0_i32_0 : i32, i32, i32
  }
}

</mosaic_0001>

<bundles_post_ra>
// kernel: tpu_custom_call.1
= control target key start
LH: loop header
LB: loop body
LE: loop exit
PB: predicated region body
PF: predicated region fallthrough
CT: control target
= control target key end

     0   :  { %9 = vsyncpa [#allocation3], 0  ;;  %s1266_s0 = inlined_call_operand.hbm [shape: f32[4,16,64], index: 0, kind: input, shape index: {}]   ;;  %s1267_s1 = inlined_call_operand.hbm [shape: bf16[192,128], index: 1, kind: input, shape index: {}]   ;;  %s1268_s2 = inlined_call_operand.hbm [shape: bf16[4,16,128], index: 2, kind: output, shape index: {0}]   ;;  %s1269_s3 = inlined_call_operand.hbm [shape: f32[2,2,128], index: 3, kind: output, shape index: {1}]  }
   0x1   :  { %11 = vsyncpa [#allocation3 + $0x1], 0 }
   0x2   :  { %12 = vsyncpa [#allocation6], 0 }
   0x3   :  { %13 = vsyncpa [#allocation4], 0 }
   0x4   :  { %15 = vsyncpa [#allocation4 + $0x1], 0 }
   0x5   :  { %16 = vsyncpa [#allocation9], 0 }
   0x6   :  { %18 = vsyncpa [#allocation9 + $0x1], 0  ;;  %s1073_s12 = smov 0   ;;  %s1075_s13 = smov 0  }
   0x7   :  { %s1077_s14 = smov 0   ;;  %s1079_s15 = smov 0  }
   0x8 LB: > { %s1094_s16 = sadd.s32 4294967295, %s1044_s15   ;;  %s708_s17 = sadd.s32 4294967294, %s1044_s15   ;;  %s1044_s15 = sphi %s1079_s15, %s1283_s15   ;;  %s1040_s14 = sphi %s1077_s14, %s1282_s14   ;;  %s1036_s13 = sphi %s1075_s13, %s1281_s13   ;;  %s1032_s12 = sphi %s1073_s12, %s1280_s12  }
   0x9   : > { %p44_p0 = scmp.ne.s32.totalorder %s1036_s13, %s1032_s12  ;;  %p45_p1 = scmp.eq.s32.totalorder %s1094_s16, 0 }
   0xa   : > { %p89_p2 = scmp.eq.s32.totalorder %s1094_s16, 1  ;;  %p95_p3 = scmp.eq.s32.totalorder %s708_s17, 1 }
   0xb   : > { %p1103_p4 = por %p45_p1, %p44_p0  ;;  %p709_p5 = scmp.ge.s32.totalorder %s1044_s15, 1 }
   0xc   : > { %p1108_p6 = por %p95_p3, %p44_p0  ;;  %p128_p7 = scmp.lt.s32.totalorder %s1044_s15, 3 }
   0xd   : > { %s139_s22 = sshll.u32 %s1267_s1, 4  ;;  %s1046_s24 = smov [#allocation5]   ;;  %s140_s22 = int_to_ptr.hbm [resolvable:$true] %s139_s22 }
   0xe   : > { %p1116_p8 = pnand %p709_p5, %p128_p7  ;;  %s141_s25 = sshll.u32 %s1046_s24, 4  ;;  %s142_s25 = int_to_ptr.vmem [resolvable:$true] %s141_s25 }
   0xf   : > { %s1126_s26 = sadd.s32 1, %s1044_s15   ;;  %s1047_s27 = smov 64  }
  0x10   : > { %p824_p9 = pneg %p1116_p8  ;;  %s1048_s28 = smov 4  }
  0x11   : > { %s28_s29 = ssub.s32 %s1044_s15, %s1126_s26  ;;  %s31_s30 = sadd.s32 1, %s1040_s14 }
  0x12   : > { %p825_p10 = pnand %p824_p9, %p45_p1  ;;  %p29_p12 = scmp.eq.s32.totalorder %s28_s29, 0 }
  0x13   : > { %p38_p13 = scmp.ne.s32.totalorder %s1040_s14, %s1036_s13  ;;  %p39_p0 = scmp.eq.s32.totalorder %s1044_s15, 0 }
  0x14   : > { %827 = dma.hbm_to_vmem [thread:$0]  (!%p825_p10), %s140_s22, 1536, %s142_s25, [#allocation6], %s1047_s27, %s1047_s27, %s1048_s28  }
  0x15   : > { %p840_p3 = scmp.lt.s32.totalorder %s1044_s15, 2  ;;  %p40_p5 = por %p39_p0, %p38_p13 }
  0x16   : > { %s1136_s4 = scalar_select %p29_p12, %s1040_s14, %s31_s30  }
  0x17   : > { %p1140_p7 = por %p89_p2, %p38_p13  ;;  %s155_s6 = sand.u32 1, %s1040_s14  }
  0x18   : > { %s784_s7 = sshll.u32 %s1044_s15, 5  ;;  %s712_s8 = sshll.u32 %s155_s6, 5 }
  0x19   : > { %s165_s11 = scalar_lea.hbm %s1266_s0, %s784_s7  ;;  %s159_s20 = scalar_lea.vmem [#allocation2], %s712_s8 }
  0x1a   : > { %s166_s17 = sshll.u32 %s165_s11, 4  ;;  %s168_s21 = sshll.u32 %s159_s20, 4  ;;  %s167_s17 = int_to_ptr.hbm [resolvable:$true] %s166_s17  ;;  %s169_s21 = int_to_ptr.vmem [resolvable:$true] %s168_s21 }
  0x1b   : > { %p1151_p9 = pnand %p840_p3, %p40_p5  ;;  %s156_s24 = scalar_lea.sflag [#allocation3], %s155_s6 }
  0x1c   : > { %s912_s25 = sshra.s32 %s167_s17, 4  ;;  %s919_s30 = scalar_lea.hbm %s1266_s0, 64  ;;  %s913_s25 = int_to_ptr.hbm [resolvable:$true] %s912_s25 }
  0x1d   : > { %s914_s27 = scalar_lea.hbm %s913_s25, 32  ;;  %p916_p10 = pneg %p1151_p9 }
  0x1e   : > { %p915_p2 = scmp.ne.s32.totalorder %s913_s25, %s914_s27  ;;  %p920_p0 = scmp.lt.s32.totalorder %s913_s25, %s1266_s0 }
  0x1f   : > { %p921_p3 = scmp.lt.s32.totalorder %s919_s30, %s914_s27 }
  0x20   : > { %p917_p12 = pnand %p916_p10, %p915_p2 }
  0x21   : > { %p922_p5 = por %p921_p3, %p920_p0 }
  0x22   : > { %p918_p13 = pneg %p917_p12 }
  0x24   : > { %p923_p11 = pnand %p922_p5, %p918_p13 }
  0x26   : > { %926 = shalt.err (!%p923_p11)
}
  0x27   : > { %s1049_s6 = smov 128   ;;  %s1050_s9 = smov 8  }
  0x28   : > { %831 = dma.hbm_to_vmem [thread:$0]  (!%p1151_p9), %s167_s17, 512, %s169_s21, %s156_s24, %s1049_s6, %s1049_s6, %s1050_s9  }
  0x29   : > { %180 = sbr.rel (%p1116_p8) target bundleno = 246 (0xf6), region = 28  ;;  %s1168_s10 = sand.u32 (!%p1116_p8), 1, %s1036_s13  }
  0x2a   : > { %s717_s11 = sshll.u32 (!%p1116_p8), %s1168_s10, 5  ;;  %s183_s20 = scalar_lea.sflag (!%p1116_p8), [#allocation3], %s1168_s10 }
  0x2b   : > { %s1172_s25 = scalar_lea.vmem (!%p1116_p8), [#allocation2], %s717_s11 }
  0x2e   : > { %1015 = dma.done.wait (%p1103_p4), %s183_s20, 512  }
  0x2f   : > { %1017 = vsyncadd (%p1103_p4), %s183_s20, 4294966784 }
  0x30   : > { %1019 = dma.done.wait (%p45_p1), [#allocation6], 1536  }
  0x31   : > { %1021 = vsyncadd (%p45_p1), [#allocation6], 4294965760  ;;  %v244_v0 = vlaneseq  ;;  %v792_v2 = vld [vmem:[#allocation5 + $0x38] sm:$0xff]  ;;  %v791_v6 = vld [vmem:[#allocation5 + $0x30] sm:$0xff]  ;;  %vm231_vm0 = vcmask 1040384   ;;  %vm313_vm1 = vcmask 1046528  }
  0x32   : > { %v788_v3 = vld [vmem:[#allocation5 + $0x18] sm:$0xff]  ;;  %397 = vmatpush.bf16.msra.mxu0 %v792_v2  ;;  %v787_v7 = vld [vmem:[#allocation5 + $0x10] sm:$0xff]  ;;  %810 = vmatpush.bf16.msra.mxu3 %v792_v2  ;;  %v223_v10 = vld [vmem:[%s1172_s25] sm:$0xff]  ;;  %vm386_vm4 = vcmask 523264   ;;  %s719_s18 = sshll.u32 %s1168_s10, 4  ;;  %s798_s17 = sshll.u32 %s1094_s16, 4 }
  0x33   : > { %v245_v1 = vshrl.u32 %v244_v0, 7  ;;  %v796_v4 = vld [vmem:[#allocation5 + $0x58] sm:$0xff]  ;;  %446 = vmatpush.bf16.msra.mxu1 %v788_v3  ;;  %v795_v8 = vld [vmem:[#allocation5 + $0x50] sm:$0xff]  ;;  %v224_v11 = vld [vmem:[%s1172_s25 + $0x8] sm:$0xff]  ;;  %v232_v18 = vrot.slane %v223_v10, 7  ;;  %v314_v21 = vrot.slane %v223_v10, 1  ;;  %s574_s24 = scalar_lea.hbm %s1268_s2, %s798_s17 }
  0x34   : > { %505 = vmatpush.bf16.msra.mxu2 %v796_v4  ;;  %v225_v12 = vld [vmem:[%s1172_s25 + $0x10] sm:$0xff]  ;;  %v315_v14 = vrot.slane %v224_v11, 1  ;;  %v790_v15 = vld [vmem:[#allocation5 + $0x28] sm:$0xff]  ;;  %v233_v17 = vrot.slane %v224_v11, 7  ;;  %v789_v26 = vld [vmem:[#allocation5 + $0x20] sm:$0xff]  ;;  %v352_v34 = vpack.c.bf16 %v224_v11, %v223_v10  ;;  %s212_s23 = scalar_lea.vmem [#allocation7], %s719_s18 }
  0x35   : > { %v246_v5 = vadd.s32 8, %v245_v1  ;;  %v253_v9 = vand.u32 15, %v245_v1  ;;  %v786_v16 = vld [vmem:[#allocation5 + $0x8] sm:$0xff]  ;;  %v317_v19 = vrot.slane %v225_v12, 1  ;;  %v243_v23 = vsel %vm231_vm0, 0.0, %v232_v18  ;;  %v785_v27 = vld [vmem:[#allocation5] sm:$0xff] }
  0x36   : > { %398 = vmatpush.bf16.msra.mxu0 %v791_v6  ;;  %v794_v20 = vld [vmem:[#allocation5 + $0x48] sm:$0xff]  ;;  %811 = vmatpush.bf16.msra.mxu3 %v791_v6  ;;  %v234_v28 = vsel %vm231_vm0, %v232_v18, %v233_v17  ;;  %v793_v30 = vld [vmem:[#allocation5 + $0x40] sm:$0xff]  ;;  %v316_v31 = vsel %vm313_vm1, %v314_v21, %v315_v14  ;;  %v226_v33 = vld [vmem:[%s1172_s25 + $0x18] sm:$0xff]  ;;  %v247_v38 = vadd.s32 16, %v245_v1  ;;  %v248_v39 = vadd.s32 24, %v245_v1  ;;  %s575_s27 = sshll.u32 %s212_s23, 4  ;;  %s1217_s27 = int_to_ptr.vmem [resolvable:$true] %s575_s27 }
  0x37   : > { %v260_v13 = vand.u32 15, %v246_v5  ;;  %447 = vmatpush.bf16.msra.mxu1 %v787_v7  ;;  %vm1185_vm2 = vcmp.eq.s32.totalorder %v253_v9, 0  ;;  %v318_v24 = vsel %vm313_vm1, %v315_v14, %v317_v19  ;;  %v353_v37 = vpack.c.bf16 %v226_v33, %v225_v12  ;;  %s577_s28 = sshll.u32 %s574_s24, 4  ;;  %s557_s29 = scalar_lea.sflag [#allocation4], %s1168_s10  ;;  %s578_s28 = int_to_ptr.hbm [resolvable:$true] %s577_s28 }
  0x38   : > { %506 = vmatpush.bf16.msra.mxu2 %v795_v8  ;;  %v309_v29 = vsel %vm1185_vm2, 0.0, %v243_v23  ;;  %v235_v40 = vrot.slane %v225_v12, 7  ;;  %v267_v41 = vand.u32 15, %v247_v38  ;;  %v274_v42 = vand.u32 15, %v248_v39  ;;  %s956_s30 = sshra.s32 %s578_s28, 4  ;;  %s962_s9 = scalar_lea.hbm %s1268_s2, 32  ;;  %s957_s30 = int_to_ptr.hbm [resolvable:$true] %s956_s30 }
  0x39   : > { %vm1191_vm3 = vcmp.eq.s32.totalorder %v260_v13, 15  ;;  %v342_v35 = vpack.c.bf16 %v234_v28, %v309_v29  ;;  %v319_v43 = vrot.slane %v226_v33, 1  ;;  %v237_v44 = vrot.slane %v226_v33, 7  ;;  %s958_s7 = scalar_lea.hbm %s957_s30, 16  ;;  %p963_p11 = scmp.lt.s32.totalorder %s957_s30, %s1268_s2 }
  0x3a   : > { %399 = vmatpush.bf16.msra.mxu0 %v790_v15  ;;  %812 = vmatpush.bf16.msra.mxu3 %v790_v15  ;;  %v339_v32 = vsel %vm1191_vm3, 0.0, %v318_v24  ;;  %v236_v45 = vsel %vm231_vm0, %v233_v17, %v235_v40  ;;  %vm299_vm5 = vcmp.eq.s32.totalorder %v267_v41, 0  ;;  %vm329_vm6 = vcmp.eq.s32.totalorder %v274_v42, 15  ;;  %p959_p1 = scmp.ne.s32.totalorder %s957_s30, %s958_s7  ;;  %p964_p9 = scmp.lt.s32.totalorder %s962_s9, %s958_s7 }
  0x3b   : > { %448 = vmatpush.bf16.msra.mxu1 %v786_v16  ;;  %v461_v36 = vpack.c.bf16 %v339_v32, %v316_v31  ;;  %v325_v46 = vsel %vm313_vm1, %v319_v43, 0.0  ;;  %v238_v47 = vsel %vm231_vm0, %v235_v40, %v237_v44  ;;  %v311_v48 = vsel %vm299_vm5, 0.0, %v236_v45 }
  0x3c   : > { %507 = vmatpush.bf16.msra.mxu2 %v794_v20  ;;  %v320_v49 = vsel %vm313_vm1, %v317_v19, %v319_v43  ;;  %v341_v50 = vsel %vm329_vm6, 0.0, %v325_v46  ;;  %v343_v51 = vpack.c.bf16 %v238_v47, %v311_v48  ;;  %p960_p4 = pnand %p959_p1, %p1140_p7  ;;  %p965_p2 = por %p964_p9, %p963_p11 }
  0x3d   : > { %v462_v52 = vpack.c.bf16 %v341_v50, %v320_v49 }
  0x3e   : > { %400 = vmatpush.bf16.msra.mxu0 %v789_v26  ;;  %813 = vmatpush.bf16.msra.mxu3 %v789_v26  ;;  %p961_p8 = pneg %p960_p4 }
  0x3f   : > { %449 = vmatpush.bf16.msra.mxu1 %v785_v27 }
  0x40   : > { %508 = vmatpush.bf16.msra.mxu2 %v793_v30  ;;  %p966_p10 = pnand %p965_p2, %p961_p8 }
  0x41   : > { %737 = vmatmul.msk.bf16.vlgmr.msra.gmra.mxu0 %vm386_vm4, %v352_v34  ;;  %738 = vmatmul.msk.bf16.vlgmr.msra.gmra.mxu3 %vm386_vm4, %v353_v37 }
  0x42   : > { %755 = vmatmul.msk.bf16.vlgmr.msra.gmra.mxu1 %vm386_vm4, %v342_v35 }
  0x43   : > { %773 = vmatmul.msk.bf16.vlgmr.msra.gmra.mxu2 %vm386_vm4, %v461_v36 }
  0x52   : > { %756 = vmatmul.msk.bf16.gmra.mxu1 %vm386_vm4, %v343_v51 }
  0x53   : > { %774 = vmatmul.msk.bf16.gmra.mxu2 %vm386_vm4, %v462_v52 }
  0xbe   : > { %v402_v54 = vpop.f32.mrf.mxu0 }
  0xbf   : > { %v451_v53 = vpop.f32.mrf.mxu1 }
  0xc0   : > { %v452_v58 = vadd.f32 %v451_v53, %v402_v54 }
  0xc4   : > { %v407_v1 = vpop.f32.mrf.mxu3 }
  0xc6   : > { %v510_v55 = vpop.f32.mrf.mxu2  ;;  %v404_v57 = vpop.f32.mrf.mxu0 }
  0xc7   : > { %v453_v56 = vpop.f32.mrf.mxu1  ;;  %v520_v61 = vadd.f32 %v510_v55, %v452_v58 }
  0xc8   : > { %v454_v59 = vadd.f32 %v453_v56, %v404_v57 }
  0xc9   : > { %v541_v8 = vmul.f32 %v520_v61, %v520_v61 }
  0xcc   : > { %v409_v7 = vpop.f32.mrf.mxu3 }
  0xce   : > { %v512_v60 = vpop.f32.mrf.mxu2 }
  0xcf   : > { %v521_v62 = vadd.f32 %v512_v60, %v454_v59  ;;  %v456_v63 = vpop.f32.mrf.mxu1 }
  0xd0   : > { %v457_v2 = vadd.f32 %v456_v63, %v407_v1 }
  0xd1   : > { %v802_v0 = vpack.c.bf16 %v521_v62, %v520_v61  ;;  %v542_v6 = vmul.f32 %v521_v62, %v521_v62  ;;  %v532_v9 = vadd.f32 %v521_v62, %v520_v61 }
  0xd3   : > { %803 = vst [vmem:[%s212_s23] sm:$0xff] %v802_v0   ;;  %v545_v13 = vadd.f32 %v542_v6, %v541_v8 }
  0xd6   : > { %v515_v3 = vpop.f32.mrf.mxu2 }
  0xd7   : > { %v522_v4 = vadd.f32 %v515_v3, %v457_v2  ;;  %v458_v5 = vpop.f32.mrf.mxu1 }
  0xd8   : > { %v459_v11 = vadd.f32 %v458_v5, %v409_v7 }
  0xd9   : > { %v543_v10 = vmul.f32 %v522_v4, %v522_v4  ;;  %v533_v14 = vadd.f32 %v532_v9, %v522_v4 }
  0xdb   : > { %v546_v16 = vadd.f32 %v545_v13, %v543_v10 }
  0xde   : > { %v517_v12 = vpop.f32.mrf.mxu2 }
  0xdf   : > { %v523_v15 = vadd.f32 %v517_v12, %v459_v11 }
  0xe1   : > { %v807_v17 = vpack.c.bf16 %v523_v15, %v522_v4  ;;  %v534_v18 = vadd.f32 %v533_v14, %v523_v15  ;;  %v544_v19 = vmul.f32 %v523_v15, %v523_v15 }
  0xe3   : > { %809 = vst [vmem:[%s212_s23 + $0x8] sm:$0xff] %v807_v17   ;;  %v535_v20 = vrot.slane %v534_v18, 4  ;;  %v547_v21 = vadd.f32 %v546_v16, %v544_v19 }
  0xe4   : > { %969 = shalt.err (!%p966_p10)
}
  0xe5   : > { %s1051_s25 = smov 64   ;;  %s1052_s18 = smov 4   ;;  %v536_v22 = vadd.f32 %v535_v20, %v534_v18  ;;  %v548_v23 = vrot.slane %v547_v21, 4 }
  0xe6   : > { %820 = dma.vmem_to_hbm [thread:$0]  (%p1140_p7), %s1217_s27, 256, %s578_s28, %s557_s29, %s1051_s25, %s1051_s25, %s1052_s18  }
  0xe7   : > { %v537_v24 = vrot.slane %v536_v22, 2  ;;  %v549_v25 = vadd.f32 %v548_v23, %v547_v21  ;;  %s720_s23 = sshll.u32 %s1168_s10, 1  ;;  %s780_s17 = sshll.u32 %s1094_s16, 1 }
  0xe8   : > { %s590_s24 = scalar_lea.hbm %s1269_s3, %s780_s17  ;;  %s219_s30 = scalar_lea.vmem [#allocation8], %s720_s23 }
  0xe9   : > { %v538_v26 = vadd.f32 %v537_v24, %v536_v22  ;;  %v550_v27 = vrot.slane %v549_v25, 2  ;;  %s592_s7 = sshll.u32 %s219_s30, 4  ;;  %s594_s27 = sshll.u32 %s590_s24, 4  ;;  %s593_s7 = int_to_ptr.vmem [resolvable:$true] %s592_s7  ;;  %s595_s27 = int_to_ptr.hbm [resolvable:$true] %s594_s27 }
  0xea   : > { %s562_s16 = scalar_lea.sflag [#allocation9], %s1168_s10  ;;  %s984_s28 = sshra.s32 %s595_s27, 4  ;;  %s985_s28 = int_to_ptr.hbm [resolvable:$true] %s984_s28 }
  0xeb   : > { %v539_v28 = vrot.slane %v538_v26, 1  ;;  %v551_v29 = vadd.f32 %v550_v27, %v549_v25  ;;  %s986_s29 = scalar_lea.hbm %s985_s28, 2  ;;  %s990_s9 = scalar_lea.hbm %s1269_s3, 4 }
  0xec   : > { %p987_p12 = scmp.ne.s32.totalorder %s985_s28, %s986_s29  ;;  %p991_p3 = scmp.lt.s32.totalorder %s985_s28, %s1269_s3 }
  0xed   : > { %v552_v30 = vrot.slane %v551_v29, 1  ;;  %v540_v31 = vadd.f32 %v539_v28, %v538_v26  ;;  %p992_p5 = scmp.lt.s32.totalorder %s990_s9, %s986_s29 }
  0xee   : > { %p988_p13 = pnand %p987_p12, %p1140_p7 }
  0xef   : > { %v553_v32 = vadd.f32 %v552_v30, %v551_v29  ;;  %p993_p1 = por %p992_p5, %p991_p3 }
  0xf0   : > { %p989_p0 = pneg %p988_p13 }
  0xf1   : > { %v554_v33 = vsel %vm231_vm0, %v540_v31, %v553_v32 }
  0xf2   : > { %555 = vst [vmem:[%s219_s30] sm:$0x3] %v554_v33  ;;  %p994_p4 = pnand %p993_p1, %p989_p0 }
  0xf4   : > { %997 = shalt.err (!%p994_p4)
}
  0xf5   : > { %821 = dma.vmem_to_hbm [thread:$0]  (%p1140_p7), %s593_s7, 32, %s595_s27, %s562_s16  }
  0xf6 PF: > { %s606_s10 = sand.u32 1, %s1032_s12   ;;  %p1279_p8 = scmp.ge.s32.totalorder %s1044_s15, 2 }
  0xf7   : > { %s607_s25 = scalar_lea.sflag [#allocation4], %s606_s10 }
  0xf8   : > { %p833_p11 = pnand %p1279_p8, %p1108_p6 }
  0xfa   : > { %p834_p9 = pneg %p833_p11 }
  0xfc   : > { %1023 = dma.done.wait (%p834_p9), %s607_s25, 256  }
  0xfd   : > { %1025 = vsyncadd (%p834_p9), %s607_s25, 4294967040  ;;  %s617_s18 = scalar_lea.sflag [#allocation9], %s606_s10 }
  0xfe   : > { %1027 = dma.done.wait (%p834_p9), %s617_s18, 32  }
  0xff   : > { %1029 = vsyncadd (%p834_p9), %s617_s18, 4294967264  ;;  %p21_p7 = scmp.ge.s32.totalorder %s1126_s26, 4   ;;  %s1280_s12 = smov %s1036_s13 }
 0x100   : > { %s1281_s13 = smov %s1040_s14  ;;  %s1282_s14 = smov %s1136_s4 }
 0x101   : > { %s1283_s15 = smov %s1126_s26  ;;  %23 = sbr.rel (!%p21_p7) target bundleno = 8 (0x8), region = 94 }
 0x106   :  { %623 = vsyncpa [#allocation3], 1 }
 0x107   :  { %625 = vsyncpa [#allocation3 + $0x1], 1 }
 0x108   :  { %626 = vsyncpa [#allocation6], 1 }
 0x109   :  { %627 = vsyncpa [#allocation4], 1 }
 0x10a   :  { %629 = vsyncpa [#allocation4 + $0x1], 1 }
 0x10b   :  { %630 = vsyncpa [#allocation9], 1 }
 0x10c   :  { %632 = vsyncpa [#allocation9 + $0x1], 1 }

</bundles_post_ra>
